<compile_context>
chip_gen: v7x
topology: tpu7x:2x2x1
jax: 0.10.0
libtpu: 0.0.40
codegen_flags: <defaults>
</compile_context>

<pallas_src>
import functools

import jax
import jax.numpy as jnp
from jax.experimental import pallas as pl
from jax.experimental.pallas import tpu as pltpu


# ----------------------------- kernel --------------------------------------
def _fused_gemm_kernel(x_ref, w_ref, b_ref, o_ref):
    # x_ref: (TM, L_pad) bf16, w_ref: (L_pad, P_pad) bf16,
    # b_ref: (1, P_pad) f32,   o_ref: (TM, P_pad) out dtype
    acc = jnp.dot(x_ref[...], w_ref[...], preferred_element_type=jnp.float32)
    o_ref[...] = (acc + b_ref[...]).astype(o_ref.dtype)


# ----------------------------- helpers --------------------------------------
def _build_trend_matrix(seq_len, kernel_size):
    """M (L, L): trend[t] = sum_j M[t, j] * x[j], edge-replication padding included."""
    k = kernel_size
    L = seq_len
    pad = (k - 1) // 2
    lpad = L + 2 * pad
    # padded index i maps to original index clip(i - pad, 0, L-1)
    idx_map = jnp.clip(jnp.arange(lpad) - pad, 0, L - 1)                       # (Lpad,)
    onehot = (idx_map[:, None] == jnp.arange(L)[None, :]).astype(jnp.float32)  # (Lpad, L)
    cs = jnp.concatenate([jnp.zeros((1, L), jnp.float32),
                          jnp.cumsum(onehot, axis=0)], axis=0)                 # (Lpad+1, L)
    # window for output t covers padded indices [t, t+k-1]
    M = (cs[k:k + L] - cs[0:L]) * (1.0 / k)                                    # (L, L)
    return M


def _round_up(v, m):
    return ((v + m - 1) // m) * m


# ----------------------------- forward --------------------------------------
@functools.partial(jax.jit, static_argnames=("kernel_size",))
def dlinear_forward(x, w_seasonal, b_seasonal, w_trend, b_trend, kernel_size):
    """x: (B, seq_len, C); w_*: (pred_len, seq_len); b_*: (pred_len,).
    Returns (B, pred_len, C), matching PyTorch DLinear.forward."""
    assert kernel_size % 2 == 1, "DLinear moving-average requires odd kernel_size"
    B, L, C = x.shape
    P = w_seasonal.shape[0]
    out_dtype = x.dtype
    out_bytes = jnp.dtype(out_dtype).itemsize

    # ---- fold decomposition + both heads into one weight (f32, trace-time, tiny) ----
    # NOTE: in a real deployment W_eff/b_eff would be precomputed once per checkpoint.
    M = _build_trend_matrix(L, kernel_size)                  # (L, L)
    ws_t = jnp.transpose(w_seasonal).astype(jnp.float32)     # (L, P)
    wt_t = jnp.transpose(w_trend).astype(jnp.float32)        # (L, P)
    w_eff = ws_t + jnp.dot(M.T, wt_t - ws_t)                 # (L, P) f32
    b_eff = (b_seasonal + b_trend).astype(jnp.float32)       # (P,)   f32

    # ---- lane-dense output: pad P to a multiple of 128 ----
    P_pad = _round_up(P, 128)
    if P_pad != P:
        w_eff = jnp.pad(w_eff, ((0, 0), (0, P_pad - P)))
        b_eff = jnp.pad(b_eff, (0, P_pad - P))
    b_eff = b_eff.reshape(1, P_pad)

    # ---- pad contraction dim L to a multiple of 128 only when the overhead is small ----
    L_pad = _round_up(L, 128)
    if (L_pad - L) * 8 > L:          # > 12.5% extra bytes -> not worth it (e.g. tiny L)
        L_pad = L
    if L_pad != L:
        w_eff = jnp.pad(w_eff, ((0, L_pad - L), (0, 0)))

    # ---- bf16 MXU feed (accumulation stays f32 in-kernel) ----
    w_eff = w_eff.astype(jnp.bfloat16)

    # ---- collapse B*C into the GEMM M dimension; transpose+cast+pad fuse under jit ----
    x2d = jnp.transpose(x, (0, 2, 1)).reshape(B * C, L).astype(jnp.bfloat16)   # (B*C, L)
    if L_pad != L:
        x2d = jnp.pad(x2d, ((0, 0), (0, L_pad - L)))
    m_total = B * C
    m_aligned = _round_up(m_total, 8)

    # ---- row-tile selection under a VMEM budget (double-buffered x/out + resident weight) ----
    per_row_bytes = 2 * L_pad * 2 + 2 * P_pad * out_bytes          # 2 bufs x-tile + 2 bufs out-tile
    fixed_bytes = 2 * L_pad * P_pad * 2 + 2 * P_pad * 4            # weight (2 bufs, bf16) + bias
    target_bytes = 20 * 1024 * 1024
    if fixed_bytes < target_bytes:
        tm_cap = ((target_bytes - fixed_bytes) // per_row_bytes) // 8 * 8
        tm_cap = max(8, min(1024, tm_cap))
    else:
        tm_cap = 8
    TM = min(tm_cap, m_aligned)

    # v7x megacore: make sure the parallel axis has >= 2 tiles when there are enough rows.
    if pl.cdiv(m_total, TM) == 1 and m_aligned >= 16:
        TM = _round_up((m_aligned + 1) // 2, 8)
    grid = (pl.cdiv(m_total, TM),)      # ragged last tile handled by the grid (rows independent)

    est_bytes = fixed_bytes + TM * per_row_bytes
    vmem_limit = 40 * 1024 * 1024 if est_bytes > 12 * 1024 * 1024 else None

    out2d = pl.pallas_call(
        _fused_gemm_kernel,
        out_shape=jax.ShapeDtypeStruct((m_total, P_pad), out_dtype),
        grid_spec=pltpu.PrefetchScalarGridSpec(
            num_scalar_prefetch=0,
            grid=grid,
            in_specs=[
                pl.BlockSpec((TM, L_pad), lambda i: (i, 0)),       # x rows (bf16)
                pl.BlockSpec((L_pad, P_pad), lambda i: (0, 0)),    # fused weight (resident, bf16)
                pl.BlockSpec((1, P_pad), lambda i: (0, 0)),        # fused bias (resident, f32)
            ],
            out_specs=pl.BlockSpec((TM, P_pad), lambda i: (i, 0)),
        ),
        compiler_params=pltpu.CompilerParams(
            dimension_semantics=("parallel",),
            vmem_limit_bytes=vmem_limit,
        ),
    )(x2d, w_eff, b_eff)

    # slice P only when needed; slice + transpose fuse into one copy under jit
    out = out2d if P_pad == P else out2d[:, :P]
    out = out.reshape(B, C, P)                                # metadata-only
    return jnp.transpose(out, (0, 2, 1))                      # (B, P, C)


# ----------------------------- reference ------------------------------------
def dlinear_reference(x, w_seasonal, b_seasonal, w_trend, b_trend, kernel_size):
    """Pure-JAX reference mirroring the PyTorch module exactly (f32)."""
    k = kernel_size
    L = x.shape[1]
    pad = (k - 1) // 2
    front = jnp.repeat(x[:, 0:1, :], pad, axis=1)
    end = jnp.repeat(x[:, -1:, :], pad, axis=1)
    xpad = jnp.concatenate([front, x, end], axis=1)           # (B, L + k - 1, C)
    windows = jnp.stack([xpad[:, i:i + L, :] for i in range(k)], axis=0)
    trend = jnp.mean(windows, axis=0)                         # (B, L, C)
    seasonal = x - trend
    so = jnp.einsum('blc,pl->bpc', seasonal, w_seasonal) + b_seasonal[None, :, None]
    to = jnp.einsum('blc,pl->bpc', trend, w_trend) + b_trend[None, :, None]
    return so + to                                            # (B, P, C)


if __name__ == "__main__":
    B, L, C, P, K = 2, 16, 4, 8, 5  # batch, seq_len, channels, pred_len, kernel_size

    key = jax.random.PRNGKey(0)
    kx, kws, kbs, kwt, kbt = jax.random.split(key, 5)

    x = jax.random.normal(kx, (B, L, C), dtype=jnp.float32)

    # deterministic parameter init (same shapes as nn.Linear(seq_len, pred_len))
    bound = 1.0 / (L ** 0.5)
    w_seasonal = jax.random.uniform(kws, (P, L), jnp.float32, -bound, bound)
    b_seasonal = jax.random.uniform(kbs, (P,), jnp.float32, -bound, bound)
    w_trend = jax.random.uniform(kwt, (P, L), jnp.float32, -bound, bound)
    b_trend = jax.random.uniform(kbt, (P,), jnp.float32, -bound, bound)

    out = dlinear_forward(x, w_seasonal, b_seasonal, w_trend, b_trend, kernel_size=K)
    out = jax.block_until_ready(out)

    ref = dlinear_reference(x, w_seasonal, b_seasonal, w_trend, b_trend, K)
    assert out.shape == (B, P, C), out.shape
    # bf16 MXU inputs -> slightly wider tolerance than the pure-f32 reference
    assert jnp.allclose(out, ref, atol=2e-2, rtol=2e-2), "mismatch vs reference"

    print("KERNEL_OK")
</pallas_src>

<mosaic_0001>
module attributes {stable_mosaic.version = 11 : i64} {
  func.func @_fused_gemm_kernel(%arg0: i32, %arg1: memref<8x16xbf16, #tpu.memory_space<vmem>>, %arg2: memref<16x128xbf16, #tpu.memory_space<vmem>>, %arg3: memref<1x128xf32, #tpu.memory_space<vmem>>, %arg4: memref<8x128xf32, #tpu.memory_space<vmem>>) attributes {dimension_semantics = [#tpu.dimension_semantics<parallel>], iteration_bounds = array<i64: 1>, scalar_prefetch = 0 : i64, scratch_operands = 0 : i64, tpu.core_type = #tpu.core_type<tc>, window_params = [{transform_indices = @transform_0, window_bounds = array<i64: 8, 16>}, {pipeline_mode = #tpu.pipeline_mode<synchronous>, transform_indices = @transform_1, window_bounds = array<i64: 16, 128>}, {pipeline_mode = #tpu.pipeline_mode<synchronous>, transform_indices = @transform_2, window_bounds = array<i64: 1, 128>}, {transform_indices = @transform_3, window_bounds = array<i64: 8, 128>}]} {
    %c0 = arith.constant 0 : index
    %c0_0 = arith.constant 0 : index
    %0 = vector.load %arg1[%c0, %c0_0] : memref<8x16xbf16, #tpu.memory_space<vmem>>, vector<8x16xbf16>
    %c0_1 = arith.constant 0 : index
    %c0_2 = arith.constant 0 : index
    %1 = vector.load %arg2[%c0_1, %c0_2] : memref<16x128xbf16, #tpu.memory_space<vmem>>, vector<16x128xbf16>
    %cst = arith.constant dense<0.000000e+00> : vector<8x128xf32>
    %2 = tpu.matmul %0, %1, %cst {dimension_numbers = #tpu.dot_dimension_numbers<[1], [0], [0], [1], [0, 0, 1, 1], [], []>} : vector<8x16xbf16>, vector<16x128xbf16>, vector<8x128xf32> -> vector<8x128xf32>
    %c0_3 = arith.constant 0 : index
    %c0_4 = arith.constant 0 : index
    %3 = vector.load %arg3[%c0_3, %c0_4] : memref<1x128xf32, #tpu.memory_space<vmem>>, vector<1x128xf32>
    %4 = vector.broadcast %3 : vector<1x128xf32> to vector<8x128xf32>
    %5 = arith.addf %2, %4 : vector<8x128xf32>
    %c0_5 = arith.constant 0 : index
    %c0_6 = arith.constant 0 : index
    %6 = vector.load %arg4[%c0_5, %c0_6] : memref<8x128xf32, #tpu.memory_space<vmem>>, vector<8x128xf32>
    tpu.vector_store %arg4[%c0_5, %c0_6], %5 {strides = array<i32>} : memref<8x128xf32, #tpu.memory_space<vmem>>, vector<8x128xf32>,
    return
  }
  func.func @transform_0(%arg0: i32) -> (i32, i32) {
    %c0_i32 = arith.constant 0 : i32
    %c0_i32_0 = arith.constant 0 : i32
    return %arg0, %c0_i32 : i32, i32
  }
  func.func @transform_1(%arg0: i32) -> (i32, i32) {
    %c0_i32 = arith.constant 0 : i32
    %c0_i32_0 = arith.constant 0 : i32
    %c0_i32_1 = arith.constant 0 : i32
    return %c0_i32, %c0_i32_0 : i32, i32
  }
  func.func @transform_2(%arg0: i32) -> (i32, i32) {
    %c0_i32 = arith.constant 0 : i32
    %c0_i32_0 = arith.constant 0 : i32
    %c0_i32_1 = arith.constant 0 : i32
    return %c0_i32, %c0_i32_0 : i32, i32
  }
  func.func @transform_3(%arg0: i32) -> (i32, i32) {
    %c0_i32 = arith.constant 0 : i32
    %c0_i32_0 = arith.constant 0 : i32
    return %arg0, %c0_i32 : i32, i32
  }
}

</mosaic_0001>

<bundles_post_ra>
// kernel: dlinear_forward.1
= control target key start
LH: loop header
LB: loop body
LE: loop exit
PB: predicated region body
PF: predicated region fallthrough
CT: control target
= control target key end

     0   :  { %v130_v1 = vmov 0.0   ;;  %vm131_vm0 = vmmov 0   ;;  %vm32_vm1 = vcmask 130048   ;;  %s174_s0 = inlined_call_operand.vmem [shape: bf16[8,16], index: 0, kind: input, shape index: {}]   ;;  %s175_s1 = inlined_call_operand.vmem [shape: bf16[16,128], index: 1, kind: input, shape index: {}]   ;;  %s176_s2 = inlined_call_operand.vmem [shape: f32[1,128], index: 2, kind: input, shape index: {}]   ;;  %s177_s3 = inlined_call_operand.hbm [shape: f32[8,128], index: 3, kind: output, shape index: {}]  }
   0x1   :  { %v105_v0 = vld [vmem:[%s175_s1] sm:$0xff]   ;;  %96 = vmatprep.subr.bf16.mxu0 %v130_v1  ;;  %98 = vmatprep.mubr.msk.bf16.mxu0 %vm131_vm0, %v130_v1 }
   0x2   :  { %97 = vmatpush3.bf16.msra.mxu0 %v105_v0  ;;  %v16_v2 = vld [vmem:[%s174_s0] sm:$0xf] }
   0x3   :  { %8 = vsyncpa [#allocation3], 0  ;;  %v91_v3 = vld [vmem:[%s176_s2] ss:$0 sm:$0xff]  ;;  %s132_s18 = smov [#allocation2]  }
   0x4   :  { %s83_s19 = sshll.u32 %s132_s18, 4  ;;  %s84_s19 = int_to_ptr.vmem [resolvable:$true] %s83_s19 }
   0x5   :  { %99 = vmatmul.mubr.msk.bf16.vlgmr.msra.gmra.mrb[0].mxu0 %vm32_vm1, %v16_v2  ;;  %s106_s1 = scalar_lea.vmem %s84_s19, 128  ;;  %p111_p1 = scmp.lt.s32.totalorder %s84_s19, %s84_s19 }
   0x6   :  { %p107_p0 = scmp.ne.s32.totalorder %s84_s19, %s106_s1  ;;  %p112_p2 = scmp.lt.s32.totalorder %s106_s1, %s106_s1 }
   0x8   :  { %p113_p3 = por %p112_p2, %p111_p1 }
   0xa   :  { %p114_p4 = pnand %p113_p3, %p107_p0 }
  0xd8   :  { %v70_v4 = vpop.f32.mrb[0].mxu0 }
  0xd9   :  { %v71_v5 = vadd.f32 %v91_v3, %v70_v4  ;;  %v100_v6 = vpop.f32.mrb[1].mxu0 }
  0xda   :  { %v73_v7 = vpop.f32.mrb[2].mxu0 }
  0xdb   :  { %76 = vst [vmem:[#allocation2] sm:$0xff] %v71_v5  ;;  %v101_v8 = vpop.f32.mrb[3].mxu0 }
  0xdc   :  { %117 = shalt.err (!%p114_p4)
}
  0xdd   :  { %s118_s2 = scalar_lea.hbm %s177_s3, 128 }
  0xde   :  { %p119_p5 = scmp.ne.s32.totalorder %s177_s3, %s118_s2  ;;  %p122_p6 = scmp.lt.u32.totalorder %s118_s2, %s177_s3 }
  0xe0   :  { %p124_p7 = pnand %p122_p6, %p119_p5 }
  0xe2   :  { %127 = shalt.err (!%p124_p7)
}
  0xe3   :  { %86 = dma.vmem_to_hbm [thread:$0]  %s84_s19, 128, %s177_s3, [#allocation3]  }
  0xe4   :  { %128 = dma.done.wait [#allocation3], 128  }
  0xe5   :  { %129 = vsyncadd [#allocation3], 4294967168 }
  0xe6   :  { %90 = vsyncpa [#allocation3], 1 }

</bundles_post_ra>
